<compile_context>
chip_gen: v7x
topology: tpu7x:2x2x1
jax: 0.10.0
libtpu: 0.0.40
codegen_flags: <defaults>
</compile_context>

<pallas_src>
import functools

import jax
import jax.numpy as jnp
from jax import lax
from jax.experimental import pallas as pl
from jax.experimental.pallas import tpu as pltpu


def _round_up(a: int, b: int) -> int:
    return (a + b - 1) // b * b


def _default_num_splits() -> int:
    # >1 only on parts with 2 TensorCores per addressable device (v4/v5p
    # megacore, v7x).  On single-TC chips the "parallel" axis is just a serial
    # outer loop that adds overhead.
    try:
        kind = jax.devices()[0].device_kind.lower()
    except Exception:
        return 1
    return 2 if any(t in kind for t in ("v4", "v5p", "v7", "7x")) else 1


def _as_rows_128(a):
    """Lane-dense (rows, 128) view of a flattened array.

    Pure metadata reshape when a.size is a multiple of 128 and >= 1024; else a
    minimal zero-pad copy (zeros are MSE-neutral since both inputs get them).
    """
    flat = a.reshape(-1)
    n = flat.shape[0]
    target = max(_round_up(n, 128), 8 * 128)   # >= 8 rows for (8,128) tiling
    if target != n:
        # TODO(synk): a non-128-multiple size forces one zero-pad copy; there
        # is no copy-free lane-dense 2-D view of a misaligned flat array.
        flat = jnp.pad(flat, (0, target - n))
    return flat.reshape(-1, 128)


def _mse_sum_kernel(xr_ref, x_ref, out_ref, *, block_rows, chunk_rows, rows,
                    needs_mask):
    j = pl.program_id(1)

    @pl.when(j == 0)
    def _init():
        out_ref[...] = jnp.zeros_like(out_ref)

    block_idx = pl.program_id(0) * pl.num_programs(1) + j
    row_base = block_idx * block_rows

    def body(c, acc):
        start = pl.multiple_of(c * chunk_rows, chunk_rows)
        # Native-dtype loads, f32 upcast in VMEM (halves HBM traffic for bf16).
        d = (xr_ref[pl.ds(start, chunk_rows), :].astype(jnp.float32)
             - x_ref[pl.ds(start, chunk_rows), :].astype(jnp.float32))
        sq = d * d
        if needs_mask:
            # Partial last block / dead trailing steps: zero out rows >= rows.
            ridx = lax.broadcasted_iota(jnp.int32, (chunk_rows, 128), 0)
            valid = (row_base + start + ridx) < rows
            sq = jnp.where(valid, sq, 0.0)
        return acc + jnp.sum(sq.reshape(-1, 8, 128), axis=0)

    acc = lax.fori_loop(0, block_rows // chunk_rows, body,
                        jnp.zeros((8, 128), jnp.float32), unroll=True)
    # Output block index is constant over j -> resident accumulator (P3).
    out_ref[...] += acc


def vae_loss(x_recon, x, mu, logvar, *, num_splits=None,
             max_block_bytes=2 * 1024 * 1024):
    """sum((x_recon - x)^2) - 0.5 * sum(1 + logvar - mu^2 - exp(logvar))."""
    assert x_recon.shape == x.shape, "x_recon and x must have the same shape"
    assert mu.shape == logvar.shape, "mu and logvar must have the same shape"

    if num_splits is None:
        num_splits = _default_num_splits()

    xr2 = _as_rows_128(x_recon)
    x2 = _as_rows_128(x)
    rows = xr2.shape[0]                      # static, >= 8

    itemsize = max(jnp.dtype(x_recon.dtype).itemsize,
                   jnp.dtype(x.dtype).itemsize)
    # ~max_block_bytes per in-flight block per input, scaled by dtype width.
    cand = max(8, (max_block_bytes // (128 * itemsize)) // 8 * 8)
    per_split = _round_up(pl.cdiv(rows, num_splits), 8)
    rows_floor8 = (rows // 8) * 8
    block_rows = min(cand, per_split, rows_floor8)      # multiple of 8, <= rows
    chunk_rows = min(512, block_rows)
    block_rows = (block_rows // chunk_rows) * chunk_rows

    total_blocks = pl.cdiv(rows, block_rows)
    n_steps = pl.cdiv(total_blocks, num_splits)
    # Any coverage beyond the real row extent (partial last block and/or dead
    # trailing steps of a split) is zeroed by the in-kernel mask.
    needs_mask = (num_splits * n_steps * block_rows) != rows
    last_block = total_blocks - 1

    def rec_index_map(i, j):
        # Clamp dead trailing steps onto the last real block (re-read, masked
        # to zero contribution in the kernel).  No-op when blocks divide evenly.
        return (jnp.minimum(i * n_steps + j, last_block), 0)

    rec_spec = pl.BlockSpec((block_rows, 128), rec_index_map)

    kernel = functools.partial(_mse_sum_kernel, block_rows=block_rows,
                               chunk_rows=chunk_rows, rows=rows,
                               needs_mask=needs_mask)

    partials = pl.pallas_call(
        kernel,
        out_shape=jax.ShapeDtypeStruct((num_splits, 8, 128), jnp.float32),
        grid_spec=pltpu.PrefetchScalarGridSpec(
            num_scalar_prefetch=0,
            grid=(num_splits, n_steps),
            in_specs=[rec_spec, rec_spec],
            out_specs=pl.BlockSpec((None, 8, 128), lambda i, j: (i, 0, 0)),
        ),
        compiler_params=pltpu.CompilerParams(
            dimension_semantics=("parallel", "arbitrary")),
    )(xr2, x2)

    mse = jnp.sum(partials)

    # KLD on the tiny (batch, latent) stats in plain jnp (keeps two resident
    # VMEM buffers and a cold branch out of the streaming kernel).
    mu32 = mu.astype(jnp.float32)
    lv32 = logvar.astype(jnp.float32)
    kld = -0.5 * jnp.sum(1.0 + lv32 - mu32 * mu32 - jnp.exp(lv32))
    return mse + kld


if __name__ == "__main__":
    def ref_loss(xr, xx, m, lv):
        xr = xr.astype(jnp.float32)
        xx = xx.astype(jnp.float32)
        m = m.astype(jnp.float32)
        lv = lv.astype(jnp.float32)
        mse = jnp.sum((xr - xx) ** 2)
        kld = -0.5 * jnp.sum(1.0 + lv - m * m - jnp.exp(lv))
        return mse + kld

    key = jax.random.PRNGKey(0)
    k1, k2, k3, k4 = jax.random.split(key, 4)

    # --- test 1: small f32 NCHW recon, 128-aligned size -> zero-copy reshape ---
    B, C, H, W, LATENT = 2, 4, 16, 16, 32
    x_recon = jax.random.normal(k1, (B, C, H, W), dtype=jnp.float32)
    x = jax.random.normal(k2, (B, C, H, W), dtype=jnp.float32)
    mu = jax.random.normal(k3, (B, LATENT), dtype=jnp.float32)
    logvar = 0.1 * jax.random.normal(k4, (B, LATENT), dtype=jnp.float32)

    loss = jax.block_until_ready(vae_loss(x_recon, x, mu, logvar))
    ref = ref_loss(x_recon, x, mu, logvar)
    assert jnp.allclose(loss, ref, rtol=1e-5, atol=1e-3), (loss, ref)

    # --- test 2: bf16, non-128-multiple size, tiny blocks -> multi-step
    #             reduction + partial-last-block masking path ---
    k5, k6, k7, k8 = jax.random.split(jax.random.PRNGKey(0), 4)
    B2, C2, H2, W2, LAT2 = 4, 3, 31, 31, 48
    xr_b = jax.random.normal(k5, (B2, C2, H2, W2), dtype=jnp.bfloat16)
    x_b = jax.random.normal(k6, (B2, C2, H2, W2), dtype=jnp.bfloat16)
    mu_b = jax.random.normal(k7, (B2, LAT2), dtype=jnp.bfloat16)
    lv_b = (0.1 * jax.random.normal(k8, (B2, LAT2))).astype(jnp.bfloat16)

    loss_b = jax.block_until_ready(
        vae_loss(xr_b, x_b, mu_b, lv_b, num_splits=1,
                 max_block_bytes=8 * 128 * 2))
    ref_b = ref_loss(xr_b, x_b, mu_b, lv_b)
    assert jnp.allclose(loss_b, ref_b, rtol=1e-3, atol=1e-1), (loss_b, ref_b)

    # --- test 3: explicit num_splits=2 with an odd block count -> exercises the
    #             clamped/masked dead-step path of the parallel split ---
    k9, k10 = jax.random.split(jax.random.PRNGKey(1), 2)
    xr_c = jax.random.normal(k9, (3, 1024), dtype=jnp.float32)
    x_c = jax.random.normal(k10, (3, 1024), dtype=jnp.float32)
    loss_c = jax.block_until_ready(
        vae_loss(xr_c, x_c, mu, logvar, num_splits=2,
                 max_block_bytes=8 * 128 * 4))
    ref_c = ref_loss(xr_c, x_c, mu, logvar)
    assert jnp.allclose(loss_c, ref_c, rtol=1e-5, atol=1e-3), (loss_c, ref_c)

    print("KERNEL_OK")
</pallas_src>

<mosaic_0001>
module attributes {stable_mosaic.version = 11 : i64} {
  func.func @_mse_sum_kernel(%arg0: i32, %arg1: i32, %arg2: memref<16x128xf32, #tpu.memory_space<vmem>>, %arg3: memref<16x128xf32, #tpu.memory_space<vmem>>, %arg4: memref<1x8x128xf32, #tpu.memory_space<vmem>>) attributes {dimension_semantics = [#tpu.dimension_semantics<parallel>, #tpu.dimension_semantics<arbitrary>], iteration_bounds = array<i64: 1, 1>, scalar_prefetch = 0 : i64, scratch_operands = 0 : i64, tpu.core_type = #tpu.core_type<tc>, window_params = [{transform_indices = @transform_0, window_bounds = array<i64: 16, 128>}, {transform_indices = @transform_1, window_bounds = array<i64: 16, 128>}, {transform_indices = @transform_2, window_bounds = array<i64: 1, 8, 128>}]} {
    %c0_i32 = arith.constant 0 : i32
    %0 = arith.cmpi eq, %arg1, %c0_i32 : i32
    %1 = arith.extui %0 : i1 to i32
    %c0_i32_0 = arith.constant 0 : i32
    %2 = arith.cmpi ne, %1, %c0_i32_0 : i32
    scf.if %2 {
      %cst_10 = arith.constant 0.000000e+00 : f32
      %21 = vector.broadcast %cst_10 : f32 to vector<8x128xf32>
      %c0_11 = arith.constant 0 : index
      %c0_12 = arith.constant 0 : index
      %c0_13 = arith.constant 0 : index
      %22 = vector.load %arg4[%c0_11, %c0_12, %c0_13] : memref<1x8x128xf32, #tpu.memory_space<vmem>>, vector<1x8x128xf32>
      %23 = vector.shape_cast %22 : vector<1x8x128xf32> to vector<8x128xf32>
      %24 = vector.shape_cast %21 : vector<8x128xf32> to vector<1x8x128xf32>
      tpu.vector_store %arg4[%c0_11, %c0_12, %c0_13], %24 {strides = array<i32>} : memref<1x8x128xf32, #tpu.memory_space<vmem>>, vector<1x8x128xf32>,
    } else {
    }
    %cst = arith.constant 0.000000e+00 : f32
    %3 = vector.broadcast %cst : f32 to vector<8x128xf32>
    %c0_i32_1 = arith.constant 0 : i32
    %c16_i32 = arith.constant 16 : i32
    %4 = arith.muli %c0_i32_1, %c16_i32 : i32
    %5 = tpu.assume_multiple %4, 16 : i32
    %6 = arith.index_cast %5 : i32 to index
    %c0 = arith.constant 0 : index
    %7 = vector.load %arg2[%6, %c0] : memref<16x128xf32, #tpu.memory_space<vmem>>, vector<16x128xf32>
    %8 = arith.index_cast %5 : i32 to index
    %c0_2 = arith.constant 0 : index
    %9 = vector.load %arg3[%8, %c0_2] : memref<16x128xf32, #tpu.memory_space<vmem>>, vector<16x128xf32>
    %10 = arith.subf %7, %9 : vector<16x128xf32>
    %11 = arith.mulf %10, %10 : vector<16x128xf32>
    %12 = vector.shape_cast %11 : vector<16x128xf32> to vector<2x8x128xf32>
    %cst_3 = arith.constant dense<0.000000e+00> : vector<8x128xf32>
    %13 = vector.multi_reduction <add>, %12, %cst_3 [0] : vector<2x8x128xf32> to vector<8x128xf32>
    %14 = arith.addf %3, %13 : vector<8x128xf32>
    %c1_i32 = arith.constant 1 : i32
    %c0_4 = arith.constant 0 : index
    %c0_5 = arith.constant 0 : index
    %c0_6 = arith.constant 0 : index
    %15 = vector.load %arg4[%c0_4, %c0_5, %c0_6] : memref<1x8x128xf32, #tpu.memory_space<vmem>>, vector<1x8x128xf32>
    %16 = vector.shape_cast %15 : vector<1x8x128xf32> to vector<8x128xf32>
    %17 = arith.addf %16, %14 : vector<8x128xf32>
    %c0_7 = arith.constant 0 : index
    %c0_8 = arith.constant 0 : index
    %c0_9 = arith.constant 0 : index
    %18 = vector.load %arg4[%c0_7, %c0_8, %c0_9] : memref<1x8x128xf32, #tpu.memory_space<vmem>>, vector<1x8x128xf32>
    %19 = vector.shape_cast %18 : vector<1x8x128xf32> to vector<8x128xf32>
    %20 = vector.shape_cast %17 : vector<8x128xf32> to vector<1x8x128xf32>
    tpu.vector_store %arg4[%c0_7, %c0_8, %c0_9], %20 {strides = array<i32>} : memref<1x8x128xf32, #tpu.memory_space<vmem>>, vector<1x8x128xf32>,
    return
  }
  func.func @transform_0(%arg0: i32, %arg1: i32) -> (i32, i32) {
    %c1_i32 = arith.constant 1 : i32
    %0 = arith.muli %arg0, %c1_i32 : i32
    %1 = arith.addi %0, %arg1 : i32
    %c0_i32 = arith.constant 0 : i32
    %2 = arith.minsi %1, %c0_i32 : i32
    %c0_i32_0 = arith.constant 0 : i32
    %c0_i32_1 = arith.constant 0 : i32
    return %2, %c0_i32_0 : i32, i32
  }
  func.func @transform_1(%arg0: i32, %arg1: i32) -> (i32, i32) {
    %c1_i32 = arith.constant 1 : i32
    %0 = arith.muli %arg0, %c1_i32 : i32
    %1 = arith.addi %0, %arg1 : i32
    %c0_i32 = arith.constant 0 : i32
    %2 = arith.minsi %1, %c0_i32 : i32
    %c0_i32_0 = arith.constant 0 : i32
    %c0_i32_1 = arith.constant 0 : i32
    return %2, %c0_i32_0 : i32, i32
  }
  func.func @transform_2(%arg0: i32, %arg1: i32) -> (i32, i32, i32) {
    %c0_i32 = arith.constant 0 : i32
    %c0_i32_0 = arith.constant 0 : i32
    %c0_i32_1 = arith.constant 0 : i32
    return %arg0, %c0_i32, %c0_i32_0 : i32, i32, i32
  }
}

</mosaic_0001>

<bundles_post_ra>
// kernel: tpu_custom_call.1
= control target key start
LH: loop header
LB: loop body
LE: loop exit
PB: predicated region body
PF: predicated region fallthrough
CT: control target
= control target key end

     0   :  { %7 = vsyncpa [#allocation3], 0  ;;  %s232_s0 = inlined_call_operand.hbm [shape: f32[16,128], index: 0, kind: input, shape index: {}]   ;;  %s233_s1 = inlined_call_operand.hbm [shape: f32[16,128], index: 1, kind: input, shape index: {}]   ;;  %s234_s2 = inlined_call_operand.hbm [shape: f32[1,8,128], index: 2, kind: output, shape index: {}]  }
   0x1   :  { %8 = vsyncpa [#allocation6], 0 }
   0x2   :  { %9 = vsyncpa [#allocation4], 0  ;;  %s176_s9 = smov [#allocation2]   ;;  %s104_s13 = scalar_lea.hbm %s232_s0, 256 }
   0x3   :  { %s21_s10 = sshll.u32 %s176_s9, 4  ;;  %p105_p0 = scmp.ne.s32.totalorder %s232_s0, %s104_s13  ;;  %s22_s10 = int_to_ptr.vmem [resolvable:$true] %s21_s10 }
   0x4   :  { %p108_p1 = scmp.lt.u32.totalorder %s104_s13, %s232_s0 }
   0x6   :  { %p110_p2 = pnand %p108_p1, %p105_p0 }
   0x8   :  { %113 = shalt.err (!%p110_p2)
}
   0x9   :  { %s114_s18 = scalar_lea.vmem %s22_s10, 256  ;;  %p119_p4 = scmp.lt.s32.totalorder %s22_s10, %s22_s10 }
   0xa   :  { %p115_p3 = scmp.ne.s32.totalorder %s22_s10, %s114_s18  ;;  %p120_p5 = scmp.lt.s32.totalorder %s114_s18, %s114_s18 }
   0xc   :  { %p121_p6 = por %p120_p5, %p119_p4 }
   0xe   :  { %p122_p7 = pnand %p121_p6, %p115_p3 }
  0x10   :  { %125 = shalt.err (!%p122_p7)
}
  0x11   :  { %s177_s19 = smov 128   ;;  %s178_s20 = smov 8  }
  0x12   :  { %27 = dma.hbm_to_vmem [thread:$0]  %s232_s0, 256, %s22_s10, [#allocation3], %s177_s19, %s177_s19, %s178_s20  }
  0x13   :  { %s179_s23 = smov [#allocation5]   ;;  %s126_s27 = scalar_lea.hbm %s233_s1, 256 }
  0x14   :  { %s39_s24 = sshll.u32 %s179_s23, 4  ;;  %p127_p8 = scmp.ne.s32.totalorder %s233_s1, %s126_s27  ;;  %s40_s24 = int_to_ptr.vmem [resolvable:$true] %s39_s24 }
  0x15   :  { %p130_p9 = scmp.lt.u32.totalorder %s126_s27, %s233_s1 }
  0x17   :  { %p132_p10 = pnand %p130_p9, %p127_p8 }
  0x19   :  { %135 = shalt.err (!%p132_p10)
}
  0x1a   :  { %s136_s4 = scalar_lea.vmem %s40_s24, 256  ;;  %p141_p12 = scmp.lt.s32.totalorder %s40_s24, %s40_s24 }
  0x1b   :  { %p137_p11 = scmp.ne.s32.totalorder %s40_s24, %s136_s4  ;;  %p142_p13 = scmp.lt.s32.totalorder %s136_s4, %s136_s4 }
  0x1d   :  { %p143_p0 = por %p142_p13, %p141_p12 }
  0x1f   :  { %p144_p1 = pnand %p143_p0, %p137_p11 }
  0x21   :  { %147 = shalt.err (!%p144_p1)
}
  0x22   :  { %45 = dma.hbm_to_vmem [thread:$0]  %s233_s1, 256, %s40_s24, [#allocation6], %s177_s19, %s177_s19, %s178_s20  }
  0x23   :  { %170 = dma.done.wait [#allocation3], 256  }
  0x24   :  { %171 = vsyncadd [#allocation3], 4294967040 }
  0x25   :  { %172 = dma.done.wait [#allocation6], 256  }
  0x26   :  { %173 = vsyncadd [#allocation6], 4294967040  ;;  %v65_v0 = vld [vmem:[#allocation2] sm:$0xff]  ;;  %v66_v1 = vld [vmem:[#allocation2 + $0x8] sm:$0xff]  ;;  %s180_s6 = smov [#allocation7]  }
  0x27   :  { %v67_v2 = vld [vmem:[#allocation5] sm:$0xff]  ;;  %v68_v3 = vld [vmem:[#allocation5 + $0x8] sm:$0xff]  ;;  %s84_s7 = sshll.u32 %s180_s6, 4  ;;  %s85_s7 = int_to_ptr.vmem [resolvable:$true] %s84_s7 }
  0x28   :  { %v69_v4 = vsub.f32 %v65_v0, %v67_v2  ;;  %v70_v5 = vsub.f32 %v66_v1, %v68_v3  ;;  %s148_s8 = scalar_lea.vmem %s85_s7, 128  ;;  %p153_p3 = scmp.lt.s32.totalorder %s85_s7, %s85_s7 }
  0x29   :  { %p149_p2 = scmp.ne.s32.totalorder %s85_s7, %s148_s8  ;;  %p154_p4 = scmp.lt.s32.totalorder %s148_s8, %s148_s8 }
  0x2a   :  { %v71_v6 = vmul.f32 %v69_v4, %v69_v4  ;;  %v72_v7 = vmul.f32 %v70_v5, %v70_v5 }
  0x2b   :  { %p155_p5 = por %p154_p4, %p153_p3 }
  0x2c   :  { %v73_v8 = vadd.f32 %v72_v7, %v71_v6 }
  0x2d   :  { %p156_p6 = pnand %p155_p5, %p149_p2 }
  0x2e   :  { %77 = vst [vmem:[#allocation7] sm:$0xff] %v73_v8 }
  0x2f   :  { %159 = shalt.err (!%p156_p6)
}
  0x30   :  { %s160_s10 = scalar_lea.hbm %s234_s2, 128 }
  0x31   :  { %p161_p7 = scmp.ne.s32.totalorder %s234_s2, %s160_s10  ;;  %p164_p8 = scmp.lt.u32.totalorder %s160_s10, %s234_s2 }
  0x33   :  { %p166_p9 = pnand %p164_p8, %p161_p7 }
  0x35   :  { %169 = shalt.err (!%p166_p9)
}
  0x36   :  { %87 = dma.vmem_to_hbm [thread:$0]  %s85_s7, 128, %s234_s2, [#allocation4]  }
  0x37   :  { %174 = dma.done.wait [#allocation4], 128  }
  0x38   :  { %175 = vsyncadd [#allocation4], 4294967168 }
  0x39   :  { %91 = vsyncpa [#allocation3], 1 }
  0x3a   :  { %92 = vsyncpa [#allocation6], 1 }
  0x3b   :  { %93 = vsyncpa [#allocation4], 1 }

</bundles_post_ra>
